<compile_context>
chip_gen: v5e
topology: v5e:2x2
jax: 0.10.0
libtpu: 0.0.40
codegen_flags: <defaults>
</compile_context>

<pallas_src>
import functools

import jax
import jax.numpy as jnp
from jax import lax
from jax.experimental import pallas as pl
from jax.experimental.pallas import tpu as pltpu


# ----------------------------------------------------------------------------
# Pallas kernel: `batch_tile` images per grid step, KH + 2 matmuls, no scratch.
# ----------------------------------------------------------------------------
def _mbconv1_kernel(pad, kh_taps, x_ref, w1_ref, b1_ref, w2_ref, wsc_ref, b2_ref,
                    out_ref):
    # x_ref:   (BT, H, W*Cin)      bf16 row-flattened NHWC input tile
    # w1_ref:  (KH, W*Cin, W*Cout) bf16 per-tap block-Toeplitz conv1 weights
    #                              (BN1 scale + horizontal zero padding folded in)
    # b1_ref:  (1, W*Cout)         f32 BN1 bias, tiled over W
    # w2_ref:  (W*Cout, W*Cout)    bf16 block-diagonal 1x1 conv weight (BN2 scale folded)
    # wsc_ref: (W*Cin, W*Cout)     bf16 block-diagonal 1x1 shortcut weight (BNsc folded)
    # b2_ref:  (1, W*Cout)         f32 merged BN2 + BNsc bias
    # out_ref: (BT, H, W*Cout)
    BT, H, WCin = x_ref.shape
    WCout = out_ref.shape[2]

    x_val = x_ref[...]
    x2d = x_val.reshape(BT * H, WCin)

    # Row iota for masking the vertical zero halo (horizontal padding is already
    # encoded in the Toeplitz weights).
    row = lax.broadcasted_iota(jnp.int32, (BT, H, 1), 1)

    # KxK conv + BN1 scale as KH accumulated matmuls; each tap's f32 partial product
    # is row-shifted with pltpu.roll (XLU) and halo rows are zeroed with a select.
    acc = jnp.zeros((BT, H, WCout), jnp.float32)
    for kh in range(kh_taps):
        t = jnp.dot(x2d, w1_ref[kh], preferred_element_type=jnp.float32)
        t = t.reshape(BT, H, WCout)
        shift = pad - kh                       # output row h consumes input row h - shift
        if shift != 0:
            t = pltpu.roll(t, shift % H, axis=1)
            valid = (row >= shift) if shift > 0 else (row < H + shift)
            t = jnp.where(valid, t, 0.0)
        acc = acc + t

    # BN1 bias + ReLU in f32, then back to bf16 for the MXU.
    y = jnp.maximum(acc + b1_ref[...], 0.0)
    y = y.reshape(BT * H, WCout).astype(w2_ref.dtype)

    # Fused (1x1 conv + BN2) and (1x1 shortcut + BNsc): two dots, no [y | x] concat.
    out = jnp.dot(y, w2_ref[...], preferred_element_type=jnp.float32)
    out = out + jnp.dot(x2d, wsc_ref[...], preferred_element_type=jnp.float32)
    out = out + b2_ref[...]

    out_ref[...] = out.reshape(BT, H, WCout).astype(out_ref.dtype)


# ----------------------------------------------------------------------------
# Wrapper: BN folding, Toeplitz / block-diagonal weight construction, pallas_call.
# ----------------------------------------------------------------------------
def _fold_bn(gamma, beta, mean, var, eps=1e-5):
    scale = (gamma / jnp.sqrt(var + eps)).astype(jnp.float32)
    bias = (beta - mean * scale).astype(jnp.float32)
    return scale, bias


def _build_weights(p, W, Cin, Cout, KH, KW, padding, compute_dtype):
    s1, bb1 = _fold_bn(p['g1'], p['b1'], p['m1'], p['v1'])
    s2, bb2 = _fold_bn(p['g2'], p['b2'], p['m2'], p['v2'])

    # conv1 -> per-tap block-Toeplitz weights (KH, W*Cin, W*Cout).  Horizontal zero
    # padding is encoded by omitting out-of-range KW taps; BN1 scale folded in.
    w1t = jnp.transpose(p['w1'].astype(jnp.float32), (2, 3, 1, 0)) * s1     # (KH,KW,Cin,Cout)
    w_in = jnp.arange(W)[:, None]
    w_out = jnp.arange(W)[None, :]
    kw_idx = w_in - w_out + padding                                         # (W_in, W_out)
    valid = (kw_idx >= 0) & (kw_idx < KW)
    kw_safe = jnp.clip(kw_idx, 0, KW - 1)
    blocks = jnp.where(valid[None, :, :, None, None], w1t[:, kw_safe, :, :], 0.0)
    w1_taps = jnp.transpose(blocks, (0, 1, 3, 2, 4)).reshape(KH, W * Cin, W * Cout)
    b1_rows = jnp.tile(bb1, W)[None, :]                                     # (1, W*Cout)

    # 1x1 conv (+BN2) and 1x1 shortcut (+BNsc) as W-block-diagonal matrices.
    w2_mat = (p['w2'][:, :, 0, 0].astype(jnp.float32) * s2[:, None]).T      # (Cout, Cout)
    if 'wsc' in p:
        ssc, bbsc = _fold_bn(p['gsc'], p['bsc'], p['msc'], p['vsc'])
        wsc_mat = (p['wsc'][:, :, 0, 0].astype(jnp.float32) * ssc[:, None]).T  # (Cin, Cout)
    else:  # identity shortcut (in_channels == out_channels)
        assert Cin == Cout, "identity shortcut requires Cin == Cout"
        wsc_mat = jnp.eye(Cin, dtype=jnp.float32)
        bbsc = jnp.zeros((Cout,), jnp.float32)
    eye_w = jnp.eye(W, dtype=jnp.float32)
    w2_blk = jnp.einsum('uv,io->uivo', eye_w, w2_mat).reshape(W * Cout, W * Cout)
    wsc_blk = jnp.einsum('uv,io->uivo', eye_w, wsc_mat).reshape(W * Cin, W * Cout)
    b2_rows = jnp.tile(bb2 + bbsc, W)[None, :]                              # (1, W*Cout)

    return (w1_taps.astype(compute_dtype), b1_rows,
            w2_blk.astype(compute_dtype), wsc_blk.astype(compute_dtype), b2_rows)


def _choose_batch_tile(N, H, vmem_of_bt, vmem_budget, m_target=128):
    divisors = [bt for bt in range(1, N + 1) if N % bt == 0]
    fits = [bt for bt in divisors if vmem_of_bt(bt) <= vmem_budget] or [divisors[0]]
    # Smallest tile that fills the MXU M dimension: full MXU rows while keeping the
    # most grid steps for pipelining / v7x's two TensorCores ("parallel" axis).
    filling = [bt for bt in fits if bt * H >= m_target]
    if filling:
        return min(filling)
    # MXU can't be filled at this batch; keep >=2 grid steps when the batch allows
    # it (v7x megacore), else take the largest tile that fits (v5e/v6e overhead).
    two_step = [bt for bt in fits if N // bt >= 2]
    return max(two_step) if two_step else max(fits)


def mbconv1_pallas(x, p, *, kernel_size=3, stride=1, padding=1, batch_tile=None,
                   compute_dtype=jnp.bfloat16, out_dtype=jnp.float32,
                   input_layout="NCHW", output_layout="NCHW",
                   vmem_budget_bytes=24 << 20):
    assert stride == 1, "kernel implements stride=1 (spatial-preserving MBConv1)"
    if input_layout == "NCHW":
        N, Cin, H, W = x.shape
    else:  # "NHWC"
        N, H, W, Cin = x.shape
    Cout = p['w1'].shape[0]
    KH = KW = kernel_size
    assert H + 2 * padding - KH + 1 == H and W + 2 * padding - KW + 1 == W, \
        "residual add requires a spatial-preserving conv"

    WCin, WCout = W * Cin, W * Cout
    w1_taps, b1_rows, w2_blk, wsc_blk, b2_rows = _build_weights(
        p, W, Cin, Cout, KH, KW, padding, compute_dtype)

    # ---- VMEM accounting + tile selection ---------------------------------------
    csz = jnp.dtype(compute_dtype).itemsize
    osz = jnp.dtype(out_dtype).itemsize
    weight_bytes = 2 * (csz * (KH * WCin * WCout + WCout * WCout + WCin * WCout)
                        + 4 * 2 * WCout)                       # (conservatively x2-buffered)

    def step_bytes(bt):
        io = 2 * bt * H * (csz * WCin + osz * WCout)            # double-buffered in/out tiles
        live = bt * H * (csz * (WCin + WCout) + 4 * 3 * WCout)  # x2d / y + acc / t / out (f32)
        return io + live

    if batch_tile is None:
        batch_tile = _choose_batch_tile(
            N, H, lambda bt: weight_bytes + step_bytes(bt), vmem_budget_bytes)
    assert N % batch_tile == 0
    vmem_limit = int(min(max(2 * (weight_bytes + step_bytes(batch_tile)), 16 << 20),
                         64 << 20))

    # ---- layout: row-flattened NHWC in compute dtype ----------------------------
    # TODO(synk): callers already holding NHWC / bf16 activations skip this transpose
    #             (it moves about as many HBM bytes as the kernel at these sizes).
    if input_layout == "NCHW":
        x_rows = jnp.transpose(x, (0, 2, 3, 1)).astype(compute_dtype).reshape(N, H, WCin)
    else:
        x_rows = x.astype(compute_dtype).reshape(N, H, WCin)

    kern = functools.partial(_mbconv1_kernel, padding, KH)
    full = lambda shape: pl.BlockSpec(shape, lambda n: (0,) * len(shape))

    out_rows = pl.pallas_call(
        kern,
        out_shape=jax.ShapeDtypeStruct((N, H, WCout), out_dtype),
        grid_spec=pltpu.PrefetchScalarGridSpec(
            num_scalar_prefetch=0,
            grid=(N // batch_tile,),
            in_specs=[
                pl.BlockSpec((batch_tile, H, WCin), lambda n: (n, 0, 0)),  # x tile
                full((KH, WCin, WCout)),                                   # conv1 Toeplitz taps
                full((1, WCout)),                                          # BN1 bias
                full((WCout, WCout)),                                      # 1x1 conv (block-diag)
                full((WCin, WCout)),                                       # 1x1 shortcut (block-diag)
                full((1, WCout)),                                          # BN2+BNsc bias
            ],
            out_specs=pl.BlockSpec((batch_tile, H, WCout), lambda n: (n, 0, 0)),
        ),
        compiler_params=pltpu.CompilerParams(
            dimension_semantics=("parallel",),
            vmem_limit_bytes=vmem_limit),
    )(x_rows, w1_taps, b1_rows, w2_blk, wsc_blk, b2_rows)

    if output_layout == "NCHW":
        return jnp.transpose(out_rows.reshape(N, H, W, Cout), (0, 3, 1, 2))
    return out_rows.reshape(N, H, W, Cout)


# ----------------------------------------------------------------------------
# Pure-JAX f32 reference (same inference-mode BN semantics) for verification.
# ----------------------------------------------------------------------------
def mbconv1_ref(x, p, *, stride=1, padding=1, eps=1e-5):
    def bn(y, g, b, m, v):
        g, b, m, v = (t[None, :, None, None] for t in (g, b, m, v))
        return (y - m) / jnp.sqrt(v + eps) * g + b

    dn = ('NCHW', 'OIHW', 'NCHW')
    out = lax.conv_general_dilated(x, p['w1'], (stride, stride),
                                   [(padding, padding)] * 2, dimension_numbers=dn)
    out = jnp.maximum(bn(out, p['g1'], p['b1'], p['m1'], p['v1']), 0.0)
    out = lax.conv_general_dilated(out, p['w2'], (1, 1), [(0, 0)] * 2,
                                   dimension_numbers=dn)
    out = bn(out, p['g2'], p['b2'], p['m2'], p['v2'])
    if 'wsc' in p:
        sc = lax.conv_general_dilated(x, p['wsc'], (1, 1), [(0, 0)] * 2,
                                      dimension_numbers=dn)
        sc = bn(sc, p['gsc'], p['bsc'], p['msc'], p['vsc'])
    else:
        sc = x
    return out + sc


def init_params(key, in_ch, out_ch, k):
    ks = jax.random.split(key, 15)
    u = lambda kk, shape, lo, hi: jax.random.uniform(kk, shape, jnp.float32, lo, hi)
    return {
        'w1': 0.1 * jax.random.normal(ks[0], (out_ch, in_ch, k, k), jnp.float32),
        'g1': u(ks[1], (out_ch,), 0.8, 1.2), 'b1': u(ks[2], (out_ch,), -0.1, 0.1),
        'm1': u(ks[3], (out_ch,), -0.2, 0.2), 'v1': u(ks[4], (out_ch,), 0.5, 1.5),
        'w2': 0.1 * jax.random.normal(ks[5], (out_ch, out_ch, 1, 1), jnp.float32),
        'g2': u(ks[6], (out_ch,), 0.8, 1.2), 'b2': u(ks[7], (out_ch,), -0.1, 0.1),
        'm2': u(ks[8], (out_ch,), -0.2, 0.2), 'v2': u(ks[9], (out_ch,), 0.5, 1.5),
        'wsc': 0.1 * jax.random.normal(ks[10], (out_ch, in_ch, 1, 1), jnp.float32),
        'gsc': u(ks[11], (out_ch,), 0.8, 1.2), 'bsc': u(ks[12], (out_ch,), -0.1, 0.1),
        'msc': u(ks[13], (out_ch,), -0.2, 0.2), 'vsc': u(ks[14], (out_ch,), 0.5, 1.5),
    }


if __name__ == "__main__":
    key = jax.random.PRNGKey(0)
    kx, kp = jax.random.split(key)

    N, Cin, Cout, H, W, K, PAD = 2, 4, 8, 16, 16, 3, 1
    x = jax.random.normal(kx, (N, Cin, H, W), jnp.float32)
    params = init_params(kp, Cin, Cout, K)

    out = mbconv1_pallas(x, params, kernel_size=K, stride=1, padding=PAD)
    out = jax.block_until_ready(out)

    ref = jax.block_until_ready(mbconv1_ref(x, params, stride=1, padding=PAD))
    assert out.shape == (N, Cout, H, W)
    # bf16 MXU operands -> loosened tolerance vs the f32 reference.
    assert jnp.allclose(out, ref, atol=5e-2, rtol=5e-2), "mismatch vs JAX reference"

    print("KERNEL_OK")
</pallas_src>

<mosaic_0001>
module attributes {stable_mosaic.version = 11 : i64} {
  func.func @_mbconv1_kernel(%arg0: i32, %arg1: memref<1x16x64xbf16, #tpu.memory_space<vmem>>, %arg2: memref<3x64x128xbf16, #tpu.memory_space<vmem>>, %arg3: memref<1x128xf32, #tpu.memory_space<vmem>>, %arg4: memref<128x128xbf16, #tpu.memory_space<vmem>>, %arg5: memref<64x128xbf16, #tpu.memory_space<vmem>>, %arg6: memref<1x128xf32, #tpu.memory_space<vmem>>, %arg7: memref<1x16x128xf32, #tpu.memory_space<vmem>>) attributes {dimension_semantics = [#tpu.dimension_semantics<parallel>], iteration_bounds = array<i64: 2>, scalar_prefetch = 0 : i64, scratch_operands = 0 : i64, tpu.core_type = #tpu.core_type<tc>, window_params = [{transform_indices = @transform_0, window_bounds = array<i64: 1, 16, 64>}, {pipeline_mode = #tpu.pipeline_mode<synchronous>, transform_indices = @transform_1, window_bounds = array<i64: 3, 64, 128>}, {pipeline_mode = #tpu.pipeline_mode<synchronous>, transform_indices = @transform_2, window_bounds = array<i64: 1, 128>}, {pipeline_mode = #tpu.pipeline_mode<synchronous>, transform_indices = @transform_3, window_bounds = array<i64: 128, 128>}, {pipeline_mode = #tpu.pipeline_mode<synchronous>, transform_indices = @transform_4, window_bounds = array<i64: 64, 128>}, {pipeline_mode = #tpu.pipeline_mode<synchronous>, transform_indices = @transform_5, window_bounds = array<i64: 1, 128>}, {transform_indices = @transform_6, window_bounds = array<i64: 1, 16, 128>}]} {
    %c0 = arith.constant 0 : index
    %c0_0 = arith.constant 0 : index
    %c0_1 = arith.constant 0 : index
    %0 = vector.load %arg1[%c0, %c0_0, %c0_1] : memref<1x16x64xbf16, #tpu.memory_space<vmem>>, vector<1x16x64xbf16>
    %1 = vector.shape_cast %0 : vector<1x16x64xbf16> to vector<16x64xbf16>
    %2 = tpu.iota {dimensions = array<i32: 1>} : vector<1x16x1xi32>
    %cst = arith.constant 0.000000e+00 : f32
    %3 = vector.broadcast %cst : f32 to vector<1x16x128xf32>
    %c0_2 = arith.constant 0 : index
    %c0_3 = arith.constant 0 : index
    %c0_4 = arith.constant 0 : index
    %4 = vector.load %arg2[%c0_2, %c0_3, %c0_4] : memref<3x64x128xbf16, #tpu.memory_space<vmem>>, vector<1x64x128xbf16>
    %5 = vector.shape_cast %4 : vector<1x64x128xbf16> to vector<64x128xbf16>
    %cst_5 = arith.constant dense<0.000000e+00> : vector<16x128xf32>
    %6 = tpu.matmul %1, %5, %cst_5 {dimension_numbers = #tpu.dot_dimension_numbers<[1], [0], [0], [1], [0, 0, 1, 1], [], []>} : vector<16x64xbf16>, vector<64x128xbf16>, vector<16x128xf32> -> vector<16x128xf32>
    %7 = vector.shape_cast %6 : vector<16x128xf32> to vector<1x16x128xf32>
    %c1_i32 = arith.constant 1 : i32
    %8 = tpu.dynamic_rotate %7 by %c1_i32 dim 1 : vector<1x16x128xf32>, i32 -> vector<1x16x128xf32>
    %c1_i32_6 = arith.constant 1 : i32
    %9 = vector.broadcast %c1_i32_6 : i32 to vector<1x16x1xi32>
    %10 = arith.cmpi sge, %2, %9 : vector<1x16x1xi32>
    %cst_7 = arith.constant 0.000000e+00 : f32
    %11 = vector.shape_cast %10 : vector<1x16x1xi1> to vector<1x16x1xi1>
    %12 = vector.broadcast %11 : vector<1x16x1xi1> to vector<1x16x128xi1>
    %13 = vector.broadcast %cst_7 : f32 to vector<1x16x128xf32>
    %14 = arith.select %12, %8, %13 : vector<1x16x128xi1>, vector<1x16x128xf32>
    %15 = arith.addf %3, %14 : vector<1x16x128xf32>
    %c1 = arith.constant 1 : index
    %c0_8 = arith.constant 0 : index
    %c0_9 = arith.constant 0 : index
    %16 = vector.load %arg2[%c1, %c0_8, %c0_9] : memref<3x64x128xbf16, #tpu.memory_space<vmem>>, vector<1x64x128xbf16>
    %17 = vector.shape_cast %16 : vector<1x64x128xbf16> to vector<64x128xbf16>
    %cst_10 = arith.constant dense<0.000000e+00> : vector<16x128xf32>
    %18 = tpu.matmul %1, %17, %cst_10 {dimension_numbers = #tpu.dot_dimension_numbers<[1], [0], [0], [1], [0, 0, 1, 1], [], []>} : vector<16x64xbf16>, vector<64x128xbf16>, vector<16x128xf32> -> vector<16x128xf32>
    %19 = vector.shape_cast %18 : vector<16x128xf32> to vector<1x16x128xf32>
    %20 = arith.addf %15, %19 : vector<1x16x128xf32>
    %c2 = arith.constant 2 : index
    %c0_11 = arith.constant 0 : index
    %c0_12 = arith.constant 0 : index
    %21 = vector.load %arg2[%c2, %c0_11, %c0_12] : memref<3x64x128xbf16, #tpu.memory_space<vmem>>, vector<1x64x128xbf16>
    %22 = vector.shape_cast %21 : vector<1x64x128xbf16> to vector<64x128xbf16>
    %cst_13 = arith.constant dense<0.000000e+00> : vector<16x128xf32>
    %23 = tpu.matmul %1, %22, %cst_13 {dimension_numbers = #tpu.dot_dimension_numbers<[1], [0], [0], [1], [0, 0, 1, 1], [], []>} : vector<16x64xbf16>, vector<64x128xbf16>, vector<16x128xf32> -> vector<16x128xf32>
    %24 = vector.shape_cast %23 : vector<16x128xf32> to vector<1x16x128xf32>
    %c15_i32 = arith.constant 15 : i32
    %25 = tpu.dynamic_rotate %24 by %c15_i32 dim 1 : vector<1x16x128xf32>, i32 -> vector<1x16x128xf32>
    %c15_i32_14 = arith.constant 15 : i32
    %26 = vector.broadcast %c15_i32_14 : i32 to vector<1x16x1xi32>
    %27 = arith.cmpi slt, %2, %26 : vector<1x16x1xi32>
    %cst_15 = arith.constant 0.000000e+00 : f32
    %28 = vector.shape_cast %27 : vector<1x16x1xi1> to vector<1x16x1xi1>
    %29 = vector.broadcast %28 : vector<1x16x1xi1> to vector<1x16x128xi1>
    %30 = vector.broadcast %cst_15 : f32 to vector<1x16x128xf32>
    %31 = arith.select %29, %25, %30 : vector<1x16x128xi1>, vector<1x16x128xf32>
    %32 = arith.addf %20, %31 : vector<1x16x128xf32>
    %c0_16 = arith.constant 0 : index
    %c0_17 = arith.constant 0 : index
    %33 = vector.load %arg3[%c0_16, %c0_17] : memref<1x128xf32, #tpu.memory_space<vmem>>, vector<1x128xf32>
    %34 = vector.shape_cast %33 : vector<1x128xf32> to vector<1x1x128xf32>
    %35 = vector.broadcast %34 : vector<1x1x128xf32> to vector<1x16x128xf32>
    %36 = arith.addf %32, %35 : vector<1x16x128xf32>
    %cst_18 = arith.constant 0.000000e+00 : f32
    %37 = vector.broadcast %cst_18 : f32 to vector<1x16x128xf32>
    %38 = arith.maximumf %36, %37 : vector<1x16x128xf32>
    %39 = vector.shape_cast %38 : vector<1x16x128xf32> to vector<16x128xf32>
    %40 = arith.truncf %39 : vector<16x128xf32> to vector<16x128xbf16>
    %c0_19 = arith.constant 0 : index
    %c0_20 = arith.constant 0 : index
    %41 = vector.load %arg4[%c0_19, %c0_20] : memref<128x128xbf16, #tpu.memory_space<vmem>>, vector<128x128xbf16>
    %cst_21 = arith.constant dense<0.000000e+00> : vector<16x128xf32>
    %42 = tpu.matmul %40, %41, %cst_21 {dimension_numbers = #tpu.dot_dimension_numbers<[1], [0], [0], [1], [0, 0, 1, 1], [], []>} : vector<16x128xbf16>, vector<128x128xbf16>, vector<16x128xf32> -> vector<16x128xf32>
    %c0_22 = arith.constant 0 : index
    %c0_23 = arith.constant 0 : index
    %43 = vector.load %arg5[%c0_22, %c0_23] : memref<64x128xbf16, #tpu.memory_space<vmem>>, vector<64x128xbf16>
    %cst_24 = arith.constant dense<0.000000e+00> : vector<16x128xf32>
    %44 = tpu.matmul %1, %43, %cst_24 {dimension_numbers = #tpu.dot_dimension_numbers<[1], [0], [0], [1], [0, 0, 1, 1], [], []>} : vector<16x64xbf16>, vector<64x128xbf16>, vector<16x128xf32> -> vector<16x128xf32>
    %45 = arith.addf %42, %44 : vector<16x128xf32>
    %c0_25 = arith.constant 0 : index
    %c0_26 = arith.constant 0 : index
    %46 = vector.load %arg6[%c0_25, %c0_26] : memref<1x128xf32, #tpu.memory_space<vmem>>, vector<1x128xf32>
    %47 = vector.broadcast %46 : vector<1x128xf32> to vector<16x128xf32>
    %48 = arith.addf %45, %47 : vector<16x128xf32>
    %49 = vector.shape_cast %48 : vector<16x128xf32> to vector<1x16x128xf32>
    %c0_27 = arith.constant 0 : index
    %c0_28 = arith.constant 0 : index
    %c0_29 = arith.constant 0 : index
    %50 = vector.load %arg7[%c0_27, %c0_28, %c0_29] : memref<1x16x128xf32, #tpu.memory_space<vmem>>, vector<1x16x128xf32>
    tpu.vector_store %arg7[%c0_27, %c0_28, %c0_29], %49 {strides = array<i32>} : memref<1x16x128xf32, #tpu.memory_space<vmem>>, vector<1x16x128xf32>,
    return
  }
  func.func @transform_0(%arg0: i32) -> (i32, i32, i32) {
    %c0_i32 = arith.constant 0 : i32
    %c0_i32_0 = arith.constant 0 : i32
    %c0_i32_1 = arith.constant 0 : i32
    return %arg0, %c0_i32, %c0_i32_0 : i32, i32, i32
  }
  func.func @transform_1(%arg0: i32) -> (i32, i32, i32) {
    %c0_i32 = arith.constant 0 : i32
    %c0_i32_0 = arith.constant 0 : i32
    %c0_i32_1 = arith.constant 0 : i32
    %c0_i32_2 = arith.constant 0 : i32
    return %c0_i32, %c0_i32_0, %c0_i32_1 : i32, i32, i32
  }
  func.func @transform_2(%arg0: i32) -> (i32, i32) {
    %c0_i32 = arith.constant 0 : i32
    %c0_i32_0 = arith.constant 0 : i32
    %c0_i32_1 = arith.constant 0 : i32
    return %c0_i32, %c0_i32_0 : i32, i32
  }
  func.func @transform_3(%arg0: i32) -> (i32, i32) {
    %c0_i32 = arith.constant 0 : i32
    %c0_i32_0 = arith.constant 0 : i32
    %c0_i32_1 = arith.constant 0 : i32
    return %c0_i32, %c0_i32_0 : i32, i32
  }
  func.func @transform_4(%arg0: i32) -> (i32, i32) {
    %c0_i32 = arith.constant 0 : i32
    %c0_i32_0 = arith.constant 0 : i32
    %c0_i32_1 = arith.constant 0 : i32
    return %c0_i32, %c0_i32_0 : i32, i32
  }
  func.func @transform_5(%arg0: i32) -> (i32, i32) {
    %c0_i32 = arith.constant 0 : i32
    %c0_i32_0 = arith.constant 0 : i32
    %c0_i32_1 = arith.constant 0 : i32
    return %c0_i32, %c0_i32_0 : i32, i32
  }
  func.func @transform_6(%arg0: i32) -> (i32, i32, i32) {
    %c0_i32 = arith.constant 0 : i32
    %c0_i32_0 = arith.constant 0 : i32
    %c0_i32_1 = arith.constant 0 : i32
    return %arg0, %c0_i32, %c0_i32_0 : i32, i32, i32
  }
}

</mosaic_0001>

<bundles_post_ra>
// kernel: tpu_custom_call.1
= control target key start
LH: loop header
LB: loop body
LE: loop exit
PB: predicated region body
PF: predicated region fallthrough
CT: control target
= control target key end

     0   :  { %11 = vsyncpa [#allocation3], 0  ;;  %s1423_s0 = inlined_call_operand.hbm [shape: bf16[2,16,64], index: 0, kind: input, shape index: {}]   ;;  %s1424_s1 = inlined_call_operand.hbm [shape: bf16[3,64,128], index: 1, kind: input, shape index: {}]   ;;  %s1425_s2 = inlined_call_operand.vmem [shape: f32[1,128], index: 2, kind: input, shape index: {}]   ;;  %s1426_s3 = inlined_call_operand.hbm [shape: bf16[128,128], index: 3, kind: input, shape index: {}]   ;;  %s1427_s4 = inlined_call_operand.hbm [shape: bf16[64,128], index: 4, kind: input, shape index: {}]   ;;  %s1428_s5 = inlined_call_operand.vmem [shape: f32[1,128], index: 5, kind: input, shape index: {}]   ;;  %s1429_s6 = inlined_call_operand.hbm [shape: f32[2,16,128], index: 6, kind: output, shape index: {}]  }
   0x1   :  { %13 = vsyncpa [#allocation3 + $0x1], 0 }
   0x2   :  { %14 = vsyncpa [#allocation6], 0 }
   0x3   :  { %15 = vsyncpa [#allocation9], 0 }
   0x4   :  { %16 = vsyncpa [#allocation4], 0 }
   0x5   :  { %18 = vsyncpa [#allocation4 + $0x1], 0  ;;  %s1240_s21 = smov 0   ;;  %s1242_s22 = smov 0  }
   0x6   :  { %s1244_s23 = smov 0   ;;  %s1246_s24 = smov 0  }
   0x7 LB: > { %s1261_s25 = sadd.s32 4294967295, %s1196_s24   ;;  %s768_s26 = sadd.s32 4294967294, %s1196_s24   ;;  %s1196_s24 = sphi %s1246_s24, %s1444_s24   ;;  %s1192_s23 = sphi %s1244_s23, %s1443_s23   ;;  %s1188_s22 = sphi %s1242_s22, %s1442_s22   ;;  %s1184_s21 = sphi %s1240_s21, %s1441_s21  }
   0x8   : > { %p44_p0 = scmp.ne.s32.totalorder %s1188_s22, %s1184_s21  ;;  %p45_p1 = scmp.eq.s32.totalorder %s1261_s25, 0 }
   0x9   : > { %p173_p2 = scmp.eq.s32.totalorder %s1261_s25, 1  ;;  %p179_p3 = scmp.eq.s32.totalorder %s768_s26, 1 }
   0xa   : > { %p1270_p4 = por %p45_p1, %p44_p0  ;;  %p769_p5 = scmp.ge.s32.totalorder %s1196_s24, 1 }
   0xb   : > { %p1275_p6 = por %p179_p3, %p44_p0  ;;  %p186_p7 = scmp.lt.s32.totalorder %s1196_s24, 3 }
   0xc   : > { %s197_s7 = sshll.u32 %s1424_s1, 4  ;;  %s1198_s9 = smov [#allocation5]   ;;  %s198_s7 = int_to_ptr.hbm [resolvable:$true] %s197_s7 }
   0xd   : > { %p1283_p8 = pnand %p769_p5, %p186_p7  ;;  %s199_s10 = sshll.u32 %s1198_s9, 4  ;;  %s200_s10 = int_to_ptr.vmem [resolvable:$true] %s199_s10 }
   0xe   : > { %s214_s14 = sshll.u32 %s1426_s3, 4  ;;  %s1430_s15 = smov 64   ;;  %s215_s14 = int_to_ptr.hbm [resolvable:$true] %s214_s14 }
   0xf   : > { %p935_p9 = pneg %p1283_p8  ;;  %s1431_s16 = smov 4  }
  0x10   : > { %s1201_s17 = smov [#allocation7]   ;;  %s228_s26 = sshll.u32 %s1427_s4, 4  ;;  %s229_s26 = int_to_ptr.hbm [resolvable:$true] %s228_s26 }
  0x11   : > { %p1291_p10 = pnand %p935_p9, %p45_p1  ;;  %s216_s18 = sshll.u32 %s1201_s17, 4  ;;  %s217_s18 = int_to_ptr.vmem [resolvable:$true] %s216_s18 }
  0x12   : > { %s1202_s29 = smov [#allocation8]   ;;  %p38_p13 = scmp.ne.s32.totalorder %s1192_s23, %s1188_s22 }
  0x13   : > { %938 = dma.hbm_to_vmem [thread:$0]  (!%p1291_p10), %s198_s7, 1536, %s200_s10, [#allocation6], %s1430_s15, %s1430_s15, %s1431_s16  }
  0x14   : > { %941 = dma.hbm_to_vmem [thread:$0]  (!%p1291_p10), %s215_s14, 1024, %s217_s18, [#allocation6], %s1430_s15, %s1430_s15, %s1431_s16  }
  0x15   : > { %s230_s30 = sshll.u32 %s1202_s29, 4  ;;  %s1313_s7 = sadd.s32 1, %s1196_s24   ;;  %s231_s30 = int_to_ptr.vmem [resolvable:$true] %s230_s30 }
  0x16   : > { %944 = dma.hbm_to_vmem [thread:$0]  (!%p1291_p10), %s229_s26, 512, %s231_s30, [#allocation9], %s1430_s15, %s1430_s15, %s1431_s16  }
  0x17   : > { %s28_s9 = ssub.s32 %s1196_s24, %s1313_s7  ;;  %s31_s10 = sadd.s32 1, %s1192_s23 }
  0x18   : > { %p29_p12 = scmp.eq.s32.totalorder %s28_s9, 0  ;;  %p39_p0 = scmp.eq.s32.totalorder %s1196_s24, 0 }
  0x19   : > { %p1331_p3 = por %p173_p2, %p38_p13  ;;  %p956_p5 = scmp.lt.s32.totalorder %s1196_s24, 2 }
  0x1a   : > { %s1327_s12 = scalar_select %p29_p12, %s1192_s23, %s31_s10  }
  0x1b   : > { %s247_s14 = sand.u32 1, %s1192_s23   ;;  %s892_s11 = sshll.u32 %s1196_s24, 3 }
  0x1c   : > { %p40_p7 = por %p39_p0, %p38_p13  ;;  %s774_s17 = sshll.u32 %s247_s14, 3 }
  0x1d   : > { %s256_s20 = scalar_lea.hbm %s1423_s0, %s892_s11  ;;  %s251_s29 = scalar_lea.vmem [#allocation2], %s774_s17 }
  0x1e   : > { %s257_s26 = sshll.u32 %s256_s20, 4  ;;  %s259_s30 = sshll.u32 %s251_s29, 4  ;;  %s258_s26 = int_to_ptr.hbm [resolvable:$true] %s257_s26  ;;  %s260_s30 = int_to_ptr.vmem [resolvable:$true] %s259_s30 }
  0x1f   : > { %p1341_p9 = pnand %p956_p5, %p40_p7  ;;  %s248_s10 = scalar_lea.sflag [#allocation3], %s247_s14 }
  0x20   : > { %s1092_s15 = sshra.s32 %s258_s26, 4  ;;  %s1099_s17 = scalar_lea.hbm %s1423_s0, 16  ;;  %s1093_s15 = int_to_ptr.hbm [resolvable:$true] %s1092_s15 }
  0x21   : > { %s1094_s16 = scalar_lea.hbm %s1093_s15, 8  ;;  %p1096_p10 = pneg %p1341_p9 }
  0x22   : > { %p1095_p2 = scmp.ne.s32.totalorder %s1093_s15, %s1094_s16  ;;  %p1100_p0 = scmp.lt.s32.totalorder %s1093_s15, %s1423_s0 }
  0x23   : > { %p1101_p5 = scmp.lt.s32.totalorder %s1099_s17, %s1094_s16 }
  0x24   : > { %p1097_p12 = pnand %p1096_p10, %p1095_p2 }
  0x25   : > { %p1102_p7 = por %p1101_p5, %p1100_p0 }
  0x26   : > { %p1098_p13 = pneg %p1097_p12 }
  0x28   : > { %p1103_p11 = pnand %p1102_p7, %p1098_p13 }
  0x2a   : > { %1106 = shalt.err (!%p1103_p11)
}
  0x2b   : > { %s1438_s14 = smov 4   ;;  %s1439_s29 = smov 64  }
  0x2c   : > { %948 = dma.hbm_to_vmem [thread:$0]  (!%p1341_p9), %s258_s26, 128, %s260_s30, %s248_s10, %s1439_s29, %s1439_s29, %s1438_s14  }
  0x2d   : > { %271 = sbr.rel (%p1283_p8) target bundleno = 373 (0x175), region = 44  ;;  %s1361_s11 = sand.u32 (!%p1283_p8), 1, %s1188_s22  }
  0x2e   : > { %s778_s15 = sshll.u32 (!%p1283_p8), %s1361_s11, 3  ;;  %s274_s16 = scalar_lea.sflag (!%p1283_p8), [#allocation3], %s1361_s11 }
  0x2f   : > { %s277_s18 = scalar_lea.vmem (!%p1283_p8), [#allocation2], %s778_s15 }
  0x32   : > { %1167 = dma.done.wait (%p1270_p4), %s274_s16, 128  }
  0x33   : > { %1169 = vsyncadd (%p1270_p4), %s274_s16, 4294967168 }
  0x34   : > { %1171 = dma.done.wait (%p45_p1), [#allocation6], 2560  }
  0x35   : > { %1173 = vsyncadd (%p45_p1), [#allocation6], 4294964736 }
  0x36   : > { %1175 = dma.done.wait (%p45_p1), [#allocation9], 512  }
  0x37   : > { %1177 = vsyncadd (%p45_p1), [#allocation9], 4294966784  ;;  %v897_v0 = vld [vmem:[#allocation5 + $0x18] sm:$0xff]  ;;  %v896_v2 = vld [vmem:[#allocation5 + $0x10] sm:$0xff]  ;;  %vm365_vm0 = vcmask 523264   ;;  %v325_v26 = vlaneseq  ;;  %s782_s26 = sshll.u32 %s1361_s11, 4 }
  0x38   : > { %v905_v1 = vld [vmem:[#allocation5 + $0x58] sm:$0xff]  ;;  %373 = vmatpush.bf16.msra.mxu1 %v897_v0  ;;  %v904_v3 = vld [vmem:[#allocation5 + $0x50] sm:$0xff]  ;;  %v895_v4 = vld [vmem:[#allocation5 + $0x8] sm:$0xff]  ;;  %s918_s10 = sshll.u32 %s1261_s25, 4  ;;  %s321_s14 = scalar_lea.vmem [#allocation10], %s782_s26 }
  0x39   : > { %484 = vmatpush.bf16.msra.mxu2 %v905_v1  ;;  %v903_v5 = vld [vmem:[#allocation5 + $0x48] sm:$0xff]  ;;  %v894_v6 = vld [vmem:[#allocation5] sm:$0xff]  ;;  %v901_v8 = vld [vmem:[#allocation5 + $0x38] sm:$0xff]  ;;  %v326_v29 = vshrl.u32 %v325_v26, 7  ;;  %s662_s20 = scalar_lea.hbm %s1429_s6, %s918_s10  ;;  %s663_s29 = sshll.u32 %s321_s14, 4  ;;  %s664_s29 = int_to_ptr.vmem [resolvable:$true] %s663_s29 }
  0x3a   : > { %v902_v7 = vld [vmem:[#allocation5 + $0x40] sm:$0xff]  ;;  %v893_v9 = vld [vmem:[%s277_s18] sm:$0xff]  ;;  %v899_v11 = vld [vmem:[#allocation5 + $0x28] sm:$0xff]  ;;  %s665_s15 = sshll.u32 %s662_s20, 4  ;;  %s651_s16 = scalar_lea.sflag [#allocation4], %s1361_s11  ;;  %s666_s15 = int_to_ptr.hbm [resolvable:$true] %s665_s15 }
  0x3b   : > { %v900_v10 = vld [vmem:[#allocation5 + $0x30] sm:$0xff]  ;;  %v898_v12 = vld [vmem:[#allocation5 + $0x20] sm:$0xff]  ;;  %v913_v13 = vld [vmem:[#allocation7 + $0x38] sm:$0xff]  ;;  %vm385_vm1 = vcmp.lt.s32.totalorder %v326_v29, 1  ;;  %vm388_vm2 = vcmp.ge.s32.totalorder %v326_v29, 1  ;;  %vm496_vm3 = vcmp.lt.s32.totalorder %v326_v29, 7 }
  0x3c   : > { %374 = vmatpush.bf16.msra.mxu1 %v896_v2  ;;  %628 = vmatpush.bf16.msra.mxu0 %v913_v13  ;;  %v917_v14 = vld [vmem:[#allocation8 + $0x18] sm:$0xff]  ;;  %v912_v15 = vld [vmem:[#allocation7 + $0x30] sm:$0xff]  ;;  %v911_v17 = vld [vmem:[#allocation7 + $0x28] sm:$0xff]  ;;  %v327_v39 = vadd.s32 8, %v326_v29  ;;  %s1136_s18 = sshra.s32 %s666_s15, 4  ;;  %s1142_s26 = scalar_lea.hbm %s1429_s6, 32  ;;  %s1137_s18 = int_to_ptr.hbm [resolvable:$true] %s1136_s18 }
  0x3d   : > { %485 = vmatpush.bf16.msra.mxu2 %v904_v3  ;;  %570 = vmatpush.bf16.msra.mxu3 %v917_v14  ;;  %v916_v16 = vld [vmem:[#allocation8 + $0x10] sm:$0xff]  ;;  %v915_v18 = vld [vmem:[#allocation8 + $0x8] sm:$0xff]  ;;  %v910_v19 = vld [vmem:[#allocation7 + $0x20] sm:$0xff]  ;;  %s1138_s25 = scalar_lea.hbm %s1137_s18, 16  ;;  %p1143_p11 = scmp.lt.s32.totalorder %s1137_s18, %s1429_s6 }
  0x3e   : > { %v914_v20 = vld [vmem:[#allocation8] sm:$0xff]  ;;  %v909_v21 = vld [vmem:[#allocation7 + $0x18] sm:$0xff]  ;;  %v908_v22 = vld [vmem:[#allocation7 + $0x10] sm:$0xff]  ;;  %vm500_vm4 = vcmp.lt.s32.totalorder %v327_v39, 15  ;;  %p1139_p1 = scmp.ne.s32.totalorder %s1137_s18, %s1138_s25  ;;  %p1144_p9 = scmp.lt.s32.totalorder %s1142_s26, %s1138_s25 }
  0x3f   : > { %v907_v23 = vld [vmem:[#allocation7 + $0x8] sm:$0xff]  ;;  %v906_v24 = vld [vmem:[#allocation7] sm:$0xff]  ;;  %v1000_v43 = vld [vmem:[%s1425_s2] ss:$0 sm:$0xff] }
  0x40   : > { %375 = vmatpush.bf16.msra.mxu1 %v895_v4  ;;  %629 = vmatpush.bf16.msra.mxu0 %v912_v15  ;;  %v1001_v55 = vld [vmem:[%s1428_s5] ss:$0 sm:$0xff]  ;;  %p1140_p4 = pnand %p1139_p1, %p1331_p3  ;;  %p1145_p2 = por %p1144_p9, %p1143_p11 }
  0x41   : > { %486 = vmatpush.bf16.msra.mxu2 %v903_v5  ;;  %571 = vmatpush.bf16.msra.mxu3 %v916_v16 }
  0x42   : > { %p1141_p8 = pneg %p1140_p4 }
  0x44   : > { %376 = vmatpush.bf16.msra.mxu1 %v894_v6  ;;  %630 = vmatpush.bf16.msra.mxu0 %v911_v17  ;;  %p1146_p10 = pnand %p1145_p2, %p1141_p8 }
  0x45   : > { %487 = vmatpush.bf16.msra.mxu2 %v902_v7  ;;  %572 = vmatpush.bf16.msra.mxu3 %v915_v18 }
  0x47   : > { %803 = vmatmul.msk.bf16.vlgmr.msra.gmra.mxu1 %vm365_vm0, %v893_v9 }
  0x48   : > { %435 = vmatpush.bf16.msrb.mxu1 %v901_v8  ;;  %837 = vmatmul.msk.bf16.vlgmr.msra.gmra.mxu2 %vm365_vm0, %v893_v9 }
  0x49   : > { %631 = vmatpush.bf16.msra.mxu0 %v910_v19  ;;  %573 = vmatpush.bf16.msra.mxu3 %v914_v20 }
  0x4c   : > { %436 = vmatpush.bf16.msrb.mxu1 %v900_v10  ;;  %854 = vmatmul.msk.bf16.vlgmr.msra.gmra.mxu3 %vm365_vm0, %v893_v9 }
  0x4d   : > { %632 = vmatpush.bf16.msra.mxu0 %v909_v21 }
  0x50   : > { %437 = vmatpush.bf16.msrb.mxu1 %v899_v11 }
  0x51   : > { %633 = vmatpush.bf16.msra.mxu0 %v908_v22 }
  0x54   : > { %438 = vmatpush.bf16.msrb.mxu1 %v898_v12 }
  0x55   : > { %634 = vmatpush.bf16.msra.mxu0 %v907_v23 }
  0x57   : > { %820 = vmatmul.msk.bf16.vlgmr.msrb.gmra.mxu1 %vm365_vm0, %v893_v9 }
  0x59   : > { %635 = vmatpush.bf16.msra.mxu0 %v906_v24 }
  0xc4   : > { %v378_v25 = vpop.f32.mrf.mxu1 }
  0xc5   : > { %v383_v31 = vrot.slane %v378_v25, 7 }
  0xcb   : > { %v489_v27 = vpop.f32.mrf.mxu2 }
  0xcc   : > { %v380_v28 = vpop.f32.mrf.mxu1  ;;  %v494_v34 = vrot.slane %v489_v27, 1 }
  0xcd   : > { %v384_v30 = vrot.slane %v380_v28, 7 }
  0xcf   : > { %v387_v33 = vsel %vm385_vm1, %v384_v30, %v383_v31  ;;  %v386_v44 = vsel %vm385_vm1, %v383_v31, %v384_v30  ;;  %v575_v54 = vpop.f32.mrf.mxu3 }
  0xd0   : > { %v394_v37 = vsel %vm388_vm2, %v387_v33, 0.0 }
  0xd3   : > { %v491_v32 = vpop.f32.mrf.mxu2 }
  0xd4   : > { %v495_v35 = vrot.slane %v491_v32, 1  ;;  %v440_v36 = vpop.f32.mrf.mxu1 }
  0xd5   : > { %v445_v38 = vadd.f32 %v440_v36, %v394_v37 }
  0xd6   : > { %v497_v40 = vsel %vm496_vm3, %v494_v34, %v495_v35  ;;  %v498_v41 = vsel %vm496_vm3, %v495_v35, %v494_v34 }
  0xd7   : > { %v507_v42 = vadd.f32 %v497_v40, %v445_v38  ;;  %v506_v47 = vsel %vm500_vm4, %v498_v41, 0.0  ;;  %v577_v59 = vpop.f32.mrf.mxu3 }
  0xd9   : > { %v513_v49 = vadd.f32 %v1000_v43, %v507_v42 }
  0xdb   : > { %v515_v51 = vmax.f32 %v513_v49, 0.0 }
  0xdc   : > { %v442_v45 = vpop.f32.mrf.mxu1 }
  0xdd   : > { %v446_v46 = vadd.f32 %v442_v45, %v386_v44 }
  0xdf   : > { %v508_v48 = vadd.f32 %v506_v47, %v446_v46 }
  0xe1   : > { %v514_v50 = vadd.f32 %v1000_v43, %v508_v48 }
  0xe3   : > { %v516_v52 = vmax.f32 %v514_v50, 0.0 }
  0xe5   : > { %v517_v53 = vpack.c.bf16 %v516_v52, %v515_v51 }
  0xe7   : > { %636 = vmatmul.bf16.vlgmr.msra.gmra.mxu0 %v517_v53 }
 0x164   : > { %v637_v56 = vpop.f32.mrf.mxu0 }
 0x165   : > { %v638_v57 = vadd.f32 %v637_v56, %v575_v54 }
 0x167   : > { %v646_v58 = vadd.f32 %v1001_v55, %v638_v57 }
 0x169   : > { %648 = vst [vmem:[%s321_s14] sm:$0xff] %v646_v58 }
 0x16c   : > { %v639_v60 = vpop.f32.mrf.mxu0 }
 0x16d   : > { %v640_v61 = vadd.f32 %v639_v60, %v577_v59 }
 0x16f   : > { %v647_v62 = vadd.f32 %v1001_v55, %v640_v61 }
 0x171   : > { %649 = vst [vmem:[%s321_s14 + $0x8] sm:$0xff] %v647_v62 }
 0x172   : > { %1149 = shalt.err (!%p1146_p10)
}
 0x173   : > { %s1203_s11 = smov 128   ;;  %s1204_s10 = smov 8  }
 0x174   : > { %933 = dma.vmem_to_hbm [thread:$0]  (%p1331_p3), %s664_s29, 256, %s666_s15, %s651_s16, %s1203_s11, %s1203_s11, %s1204_s10  }
 0x175 PF: > { %s680_s17 = sand.u32 1, %s1184_s21   ;;  %p1440_p12 = scmp.ge.s32.totalorder %s1196_s24, 2 }
 0x176   : > { %s681_s19 = scalar_lea.sflag [#allocation4], %s680_s17 }
 0x177   : > { %p950_p13 = pnand %p1440_p12, %p1275_p6 }
 0x179   : > { %p951_p0 = pneg %p950_p13 }
 0x17b   : > { %1179 = dma.done.wait (%p951_p0), %s681_s19, 256  }
 0x17c   : > { %1181 = vsyncadd (%p951_p0), %s681_s19, 4294967040  ;;  %p21_p5 = scmp.ge.s32.totalorder %s1313_s7, 4   ;;  %s1441_s21 = smov %s1188_s22 }
 0x17d   : > { %s1442_s22 = smov %s1192_s23  ;;  %s1443_s23 = smov %s1327_s12 }
 0x17e   : > { %s1444_s24 = smov %s1313_s7  ;;  %23 = sbr.rel (!%p21_p5) target bundleno = 7 (0x7), region = 103 }
 0x183   :  { %687 = vsyncpa [#allocation3], 1 }
 0x184   :  { %689 = vsyncpa [#allocation3 + $0x1], 1 }
 0x185   :  { %690 = vsyncpa [#allocation6], 1 }
 0x186   :  { %691 = vsyncpa [#allocation9], 1 }
 0x187   :  { %692 = vsyncpa [#allocation4], 1 }
 0x188   :  { %694 = vsyncpa [#allocation4 + $0x1], 1 }

</bundles_post_ra>
